<compile_context>
chip_gen: v5e
topology: v5e:2x2
jax: 0.10.0
libtpu: 0.0.40
codegen_flags: <defaults>
</compile_context>

<pallas_src>
import functools

import jax
import jax.numpy as jnp
from jax.experimental import pallas as pl
from jax.experimental.pallas import tpu as pltpu


# ----------------------------------------------------------------------------
# Pallas kernel: shared MLP (folded Conv1x1+BN) + ReLU over a block of points.
# ----------------------------------------------------------------------------
def _make_shared_mlp_kernel(num_layers):
    def kernel(*refs):
        x_ref = refs[0]
        out_ref = refs[-1]
        params = refs[1:-1]                       # (w_0, b_0, w_1, b_1, ...)
        h = x_ref[...]                            # (TM, Cin), compute dtype
        for li in range(num_layers):
            w_ref = params[2 * li]
            b_ref = params[2 * li + 1]
            # MXU matmul in the weights' dtype, f32 accumulation.
            h = jnp.dot(h.astype(w_ref.dtype), w_ref[...],
                        preferred_element_type=jnp.float32)
            # Folded-BN bias + ReLU in f32 on the VPU.
            h = jnp.maximum(h + b_ref[...], 0.0)
        out_ref[...] = h.astype(out_ref.dtype)    # lane-dense (TM, Cout_pad) store
    return kernel


def _round_up(x, k):
    return (x + k - 1) // k * k


def run_shared_mlp(x_flat, weights, biases, *, tm_target=256):
    """x_flat: (M, Cin). weights[l]: (Cin_l, Cout_l) BN-folded. biases[l]: (1, Cout_l) f32.

    The last layer is expected to be padded to a multiple of 128 output lanes.
    Returns (M, Cout_pad_last) float32.
    """
    M, cin = x_flat.shape
    num_layers = len(weights)
    cout_pad = weights[-1].shape[1]

    # Row tile: big enough to feed the MXU, but keep >=2 grid steps when possible
    # so v7x can shard the "parallel" axis across both TensorCores.  Multiple of 16
    # so bf16 sublane packing is happy too.
    tm = min(tm_target, max(16, _round_up(pl.cdiv(M, 2), 16)))
    m_pad = _round_up(M, tm)
    if m_pad != M:
        x_flat = jnp.pad(x_flat, ((0, m_pad - M), (0, 0)))
    grid = (m_pad // tm,)

    in_specs = [pl.BlockSpec((tm, cin), lambda i: (i, 0))]
    args = [x_flat]
    for w, b in zip(weights, biases):
        in_specs.append(pl.BlockSpec(w.shape, lambda i: (0, 0)))
        in_specs.append(pl.BlockSpec(b.shape, lambda i: (0, 0)))
        args.extend([w, b])

    out = pl.pallas_call(
        _make_shared_mlp_kernel(num_layers),
        out_shape=jax.ShapeDtypeStruct((m_pad, cout_pad), jnp.float32),
        grid=grid,
        in_specs=in_specs,
        out_specs=pl.BlockSpec((tm, cout_pad), lambda i: (i, 0)),
        compiler_params=pltpu.CompilerParams(
            dimension_semantics=("parallel",)),
    )(*args)
    return out[:M]


# ----------------------------------------------------------------------------
# JAX glue for pointops.nearestneighbor / interpolation (data-dependent gather).
# TODO(synk): for very large B*n this 3-NN gather could be fused into the Pallas
# kernel via scalar-prefetched indices + manual DMA; kept in XLA here.
# ----------------------------------------------------------------------------
def three_nn_interpolate(unknown, known, known_feats, *, k=3, eps=1e-8):
    """unknown (B,n,3), known (B,m,3), known_feats (B,C2,m) -> (B,n,C2)."""
    d2 = jnp.sum((unknown[:, :, None, :] - known[:, None, :, :]) ** 2, axis=-1)  # (B,n,m)
    neg_d2, idx = jax.lax.top_k(-d2, k)                      # 3 smallest distances
    dist = jnp.sqrt(jnp.maximum(-neg_d2, 0.0))               # pointops returns sqrt'd dist
    dist_recip = 1.0 / (dist + eps)
    weight = dist_recip / jnp.sum(dist_recip, axis=-1, keepdims=True)   # (B,n,k)
    kf = jnp.transpose(known_feats, (0, 2, 1))               # (B, m, C2)
    gathered = jax.vmap(lambda kf_b, idx_b: kf_b[idx_b])(kf, idx)       # (B,n,k,C2)
    return jnp.sum(weight[..., None] * gathered, axis=2)     # (B, n, C2)


def fold_bn_into_conv(conv_w, gamma, beta, run_mean, run_var, eps=1e-5):
    """conv_w: (Cin, Cout) matmul form of a bias-free 1x1 Conv2d; eval-mode BN fold."""
    scale = gamma / jnp.sqrt(run_var + eps)
    w_folded = conv_w * scale[None, :]
    bias = (beta - run_mean * scale).reshape(1, -1)
    return w_folded, bias


def _pad_last_layer(w, b, lane=128):
    cout = w.shape[1]
    cpad = _round_up(cout, lane)
    if cpad != cout:
        w = jnp.pad(w, ((0, 0), (0, cpad - cout)))
        b = jnp.pad(b, ((0, 0), (0, cpad - cout)))
    return w, b, cout


# ----------------------------------------------------------------------------
# Full PointNet2FPModule forward.
# ----------------------------------------------------------------------------
def pointnet2_fp_forward(unknown, known, unknow_feats, known_feats,
                         folded_weights, folded_biases, *,
                         compute_dtype=jnp.float32):
    """Returns (B, mlp[-1], n), matching the PyTorch module's output layout."""
    B, n, _ = unknown.shape
    if known is not None:
        interpolated = three_nn_interpolate(unknown, known, known_feats)      # (B,n,C2)
    else:
        # PyTorch: known_feats.expand(B, C2, n)  (only valid when m == 1)
        interpolated = jnp.broadcast_to(
            jnp.transpose(known_feats, (0, 2, 1)), (B, n, known_feats.shape[1]))
    if unknow_feats is not None:
        feats = jnp.concatenate(
            [interpolated, jnp.transpose(unknow_feats, (0, 2, 1))], axis=-1)   # (B,n,Cin)
    else:
        feats = interpolated

    cin = feats.shape[-1]
    x_flat = feats.reshape(B * n, cin).astype(compute_dtype)

    ws = [w.astype(compute_dtype) for w in folded_weights]
    bs = [b.astype(jnp.float32) for b in folded_biases]       # VPU math stays f32
    w_last, b_last, cout = _pad_last_layer(ws[-1], bs[-1])
    ws = ws[:-1] + [w_last]
    bs = bs[:-1] + [b_last]

    out_flat = run_shared_mlp(x_flat, ws, bs)                 # (B*n, Cout_pad) f32
    out = out_flat[:, :cout].reshape(B, n, cout)
    return jnp.transpose(out, (0, 2, 1))                      # (B, mlp[-1], n)


# ----------------------------------------------------------------------------
# Pure-JAX reference (unfolded Conv + eval BN + ReLU) for the self-test.
# ----------------------------------------------------------------------------
def reference_shared_mlp(feats, conv_ws, gammas, betas, means, vars_, eps=1e-5):
    h = feats                                                  # (B, n, Cin)
    for w, g, be, mu, var in zip(conv_ws, gammas, betas, means, vars_):
        h = jnp.einsum("bnc,cd->bnd", h, w, precision=jax.lax.Precision.HIGHEST)
        h = (h - mu) * (g / jnp.sqrt(var + eps)) + be
        h = jnp.maximum(h, 0.0)
    return jnp.transpose(h, (0, 2, 1))                         # (B, Cout, n)


if __name__ == "__main__":
    # Small deterministic config.
    B, n, m = 2, 64, 16
    C1, C2 = 6, 12
    mlp = [C1 + C2, 32, 32, 64]
    eps = 1e-5

    key = jax.random.PRNGKey(0)
    ks = jax.random.split(key, 4 + 4 * (len(mlp) - 1))
    unknown = jax.random.uniform(ks[0], (B, n, 3), dtype=jnp.float32)
    known = jax.random.uniform(ks[1], (B, m, 3), dtype=jnp.float32)
    unknow_feats = jax.random.normal(ks[2], (B, C1, n), dtype=jnp.float32)
    known_feats = jax.random.normal(ks[3], (B, C2, m), dtype=jnp.float32)

    # Conv2d(1x1, bias=False) weights (matmul form) + eval-mode BN parameters.
    conv_ws, gammas, betas, means, vars_ = [], [], [], [], []
    folded_ws, folded_bs = [], []
    for li, (cin, cout) in enumerate(zip(mlp[:-1], mlp[1:])):
        kk = ks[4 + 4 * li: 8 + 4 * li]
        w = 0.1 * jax.random.normal(kk[0], (cin, cout), dtype=jnp.float32)
        g = 1.0 + 0.1 * jax.random.normal(kk[1], (cout,), dtype=jnp.float32)
        be = 0.05 * jax.random.normal(kk[2], (cout,), dtype=jnp.float32)
        mu = 0.02 * jax.random.normal(kk[3], (cout,), dtype=jnp.float32)
        var = jnp.ones((cout,), jnp.float32)
        conv_ws.append(w); gammas.append(g); betas.append(be)
        means.append(mu); vars_.append(var)
        wf, bf = fold_bn_into_conv(w, g, be, mu, var, eps)
        folded_ws.append(wf); folded_bs.append(bf)

    # f32 compute path.
    out_f32 = pointnet2_fp_forward(unknown, known, unknow_feats, known_feats,
                                   folded_ws, folded_bs,
                                   compute_dtype=jnp.float32)
    jax.block_until_ready(out_f32)

    # Pure-JAX reference with unfolded Conv + BN.
    interpolated = three_nn_interpolate(unknown, known, known_feats)
    feats = jnp.concatenate(
        [interpolated, jnp.transpose(unknow_feats, (0, 2, 1))], axis=-1)
    ref = reference_shared_mlp(feats, conv_ws, gammas, betas, means, vars_, eps)

    assert out_f32.shape == (B, mlp[-1], n)
    assert jnp.allclose(out_f32, ref, atol=1e-4, rtol=1e-4), \
        float(jnp.max(jnp.abs(out_f32 - ref)))

    # bf16 compute path (v6e/v7x MXU-native); accumulation/bias/ReLU stay f32.
    out_bf16 = pointnet2_fp_forward(unknown, known, unknow_feats, known_feats,
                                    folded_ws, folded_bs,
                                    compute_dtype=jnp.bfloat16)
    jax.block_until_ready(out_bf16)
    assert out_bf16.shape == (B, mlp[-1], n)
    assert bool(jnp.all(jnp.isfinite(out_bf16)))
    assert jnp.allclose(out_bf16, ref, atol=5e-2, rtol=5e-2), \
        float(jnp.max(jnp.abs(out_bf16 - ref)))

    print("KERNEL_OK")
</pallas_src>

<mosaic_0001>
module attributes {stable_mosaic.version = 11 : i64} {
  func.func @kernel(%arg0: i32, %arg1: memref<64x18xf32, #tpu.memory_space<vmem>>, %arg2: memref<18x32xf32, #tpu.memory_space<vmem>>, %arg3: memref<1x32xf32, #tpu.memory_space<vmem>>, %arg4: memref<32x32xf32, #tpu.memory_space<vmem>>, %arg5: memref<1x32xf32, #tpu.memory_space<vmem>>, %arg6: memref<32x128xf32, #tpu.memory_space<vmem>>, %arg7: memref<1x128xf32, #tpu.memory_space<vmem>>, %arg8: memref<64x128xf32, #tpu.memory_space<vmem>>) attributes {dimension_semantics = [#tpu.dimension_semantics<parallel>], iteration_bounds = array<i64: 2>, scalar_prefetch = 0 : i64, scratch_operands = 0 : i64, tpu.core_type = #tpu.core_type<tc>, window_params = [{transform_indices = @transform_0, window_bounds = array<i64: 64, 18>}, {pipeline_mode = #tpu.pipeline_mode<synchronous>, transform_indices = @transform_1, window_bounds = array<i64: 18, 32>}, {pipeline_mode = #tpu.pipeline_mode<synchronous>, transform_indices = @transform_2, window_bounds = array<i64: 1, 32>}, {pipeline_mode = #tpu.pipeline_mode<synchronous>, transform_indices = @transform_3, window_bounds = array<i64: 32, 32>}, {pipeline_mode = #tpu.pipeline_mode<synchronous>, transform_indices = @transform_4, window_bounds = array<i64: 1, 32>}, {pipeline_mode = #tpu.pipeline_mode<synchronous>, transform_indices = @transform_5, window_bounds = array<i64: 32, 128>}, {pipeline_mode = #tpu.pipeline_mode<synchronous>, transform_indices = @transform_6, window_bounds = array<i64: 1, 128>}, {transform_indices = @transform_7, window_bounds = array<i64: 64, 128>}]} {
    %c0 = arith.constant 0 : index
    %c0_0 = arith.constant 0 : index
    %0 = vector.load %arg1[%c0, %c0_0] : memref<64x18xf32, #tpu.memory_space<vmem>>, vector<64x18xf32>
    %c0_1 = arith.constant 0 : index
    %c0_2 = arith.constant 0 : index
    %1 = vector.load %arg2[%c0_1, %c0_2] : memref<18x32xf32, #tpu.memory_space<vmem>>, vector<18x32xf32>
    %cst = arith.constant dense<0.000000e+00> : vector<64x32xf32>
    %2 = tpu.matmul %0, %1, %cst {dimension_numbers = #tpu.dot_dimension_numbers<[1], [0], [0], [1], [0, 0, 1, 1], [], []>} : vector<64x18xf32>, vector<18x32xf32>, vector<64x32xf32> -> vector<64x32xf32>
    %c0_3 = arith.constant 0 : index
    %c0_4 = arith.constant 0 : index
    %3 = vector.load %arg3[%c0_3, %c0_4] : memref<1x32xf32, #tpu.memory_space<vmem>>, vector<1x32xf32>
    %4 = vector.broadcast %3 : vector<1x32xf32> to vector<64x32xf32>
    %5 = arith.addf %2, %4 : vector<64x32xf32>
    %cst_5 = arith.constant 0.000000e+00 : f32
    %6 = vector.broadcast %cst_5 : f32 to vector<64x32xf32>
    %7 = arith.maximumf %5, %6 : vector<64x32xf32>
    %c0_6 = arith.constant 0 : index
    %c0_7 = arith.constant 0 : index
    %8 = vector.load %arg4[%c0_6, %c0_7] : memref<32x32xf32, #tpu.memory_space<vmem>>, vector<32x32xf32>
    %cst_8 = arith.constant dense<0.000000e+00> : vector<64x32xf32>
    %9 = tpu.matmul %7, %8, %cst_8 {dimension_numbers = #tpu.dot_dimension_numbers<[1], [0], [0], [1], [0, 0, 1, 1], [], []>} : vector<64x32xf32>, vector<32x32xf32>, vector<64x32xf32> -> vector<64x32xf32>
    %c0_9 = arith.constant 0 : index
    %c0_10 = arith.constant 0 : index
    %10 = vector.load %arg5[%c0_9, %c0_10] : memref<1x32xf32, #tpu.memory_space<vmem>>, vector<1x32xf32>
    %11 = vector.broadcast %10 : vector<1x32xf32> to vector<64x32xf32>
    %12 = arith.addf %9, %11 : vector<64x32xf32>
    %cst_11 = arith.constant 0.000000e+00 : f32
    %13 = vector.broadcast %cst_11 : f32 to vector<64x32xf32>
    %14 = arith.maximumf %12, %13 : vector<64x32xf32>
    %c0_12 = arith.constant 0 : index
    %c0_13 = arith.constant 0 : index
    %15 = vector.load %arg6[%c0_12, %c0_13] : memref<32x128xf32, #tpu.memory_space<vmem>>, vector<32x128xf32>
    %cst_14 = arith.constant dense<0.000000e+00> : vector<64x128xf32>
    %16 = tpu.matmul %14, %15, %cst_14 {dimension_numbers = #tpu.dot_dimension_numbers<[1], [0], [0], [1], [0, 0, 1, 1], [], []>} : vector<64x32xf32>, vector<32x128xf32>, vector<64x128xf32> -> vector<64x128xf32>
    %c0_15 = arith.constant 0 : index
    %c0_16 = arith.constant 0 : index
    %17 = vector.load %arg7[%c0_15, %c0_16] : memref<1x128xf32, #tpu.memory_space<vmem>>, vector<1x128xf32>
    %18 = vector.broadcast %17 : vector<1x128xf32> to vector<64x128xf32>
    %19 = arith.addf %16, %18 : vector<64x128xf32>
    %cst_17 = arith.constant 0.000000e+00 : f32
    %20 = vector.broadcast %cst_17 : f32 to vector<64x128xf32>
    %21 = arith.maximumf %19, %20 : vector<64x128xf32>
    %c0_18 = arith.constant 0 : index
    %c0_19 = arith.constant 0 : index
    %22 = vector.load %arg8[%c0_18, %c0_19] : memref<64x128xf32, #tpu.memory_space<vmem>>, vector<64x128xf32>
    tpu.vector_store %arg8[%c0_18, %c0_19], %21 {strides = array<i32>} : memref<64x128xf32, #tpu.memory_space<vmem>>, vector<64x128xf32>,
    return
  }
  func.func @transform_0(%arg0: i32) -> (i32, i32) {
    %c0_i32 = arith.constant 0 : i32
    %c0_i32_0 = arith.constant 0 : i32
    return %arg0, %c0_i32 : i32, i32
  }
  func.func @transform_1(%arg0: i32) -> (i32, i32) {
    %c0_i32 = arith.constant 0 : i32
    %c0_i32_0 = arith.constant 0 : i32
    %c0_i32_1 = arith.constant 0 : i32
    return %c0_i32, %c0_i32_0 : i32, i32
  }
  func.func @transform_2(%arg0: i32) -> (i32, i32) {
    %c0_i32 = arith.constant 0 : i32
    %c0_i32_0 = arith.constant 0 : i32
    %c0_i32_1 = arith.constant 0 : i32
    return %c0_i32, %c0_i32_0 : i32, i32
  }
  func.func @transform_3(%arg0: i32) -> (i32, i32) {
    %c0_i32 = arith.constant 0 : i32
    %c0_i32_0 = arith.constant 0 : i32
    %c0_i32_1 = arith.constant 0 : i32
    return %c0_i32, %c0_i32_0 : i32, i32
  }
  func.func @transform_4(%arg0: i32) -> (i32, i32) {
    %c0_i32 = arith.constant 0 : i32
    %c0_i32_0 = arith.constant 0 : i32
    %c0_i32_1 = arith.constant 0 : i32
    return %c0_i32, %c0_i32_0 : i32, i32
  }
  func.func @transform_5(%arg0: i32) -> (i32, i32) {
    %c0_i32 = arith.constant 0 : i32
    %c0_i32_0 = arith.constant 0 : i32
    %c0_i32_1 = arith.constant 0 : i32
    return %c0_i32, %c0_i32_0 : i32, i32
  }
  func.func @transform_6(%arg0: i32) -> (i32, i32) {
    %c0_i32 = arith.constant 0 : i32
    %c0_i32_0 = arith.constant 0 : i32
    %c0_i32_1 = arith.constant 0 : i32
    return %c0_i32, %c0_i32_0 : i32, i32
  }
  func.func @transform_7(%arg0: i32) -> (i32, i32) {
    %c0_i32 = arith.constant 0 : i32
    %c0_i32_0 = arith.constant 0 : i32
    return %arg0, %c0_i32 : i32, i32
  }
}

</mosaic_0001>

<bundles_post_ra>
// kernel: tpu_custom_call.1
= control target key start
LH: loop header
LB: loop body
LE: loop exit
PB: predicated region body
PF: predicated region fallthrough
CT: control target
= control target key end

     0   :  { %12 = vsyncpa [#allocation3], 0  ;;  %s986_s0 = inlined_call_operand.vmem [shape: f32[128,18], index: 0, kind: input, shape index: {}]   ;;  %s987_s1 = inlined_call_operand.vmem [shape: f32[18,32], index: 1, kind: input, shape index: {}]   ;;  %s988_s2 = inlined_call_operand.vmem [shape: f32[1,32], index: 2, kind: input, shape index: {}]   ;;  %s989_s3 = inlined_call_operand.vmem [shape: f32[32,32], index: 3, kind: input, shape index: {}]   ;;  %s990_s4 = inlined_call_operand.vmem [shape: f32[1,32], index: 4, kind: input, shape index: {}]   ;;  %s991_s5 = inlined_call_operand.vmem [shape: f32[32,128], index: 5, kind: input, shape index: {}]   ;;  %s992_s6 = inlined_call_operand.vmem [shape: f32[1,128], index: 6, kind: input, shape index: {}]   ;;  %s993_s7 = inlined_call_operand.hbm [shape: f32[128,128], index: 7, kind: output, shape index: {}]  }
   0x1   :  { %14 = vsyncpa [#allocation3 + $0x1], 0  ;;  %s821_s24 = smov 0   ;;  %s823_s25 = smov 0  }
   0x2   :  { %s825_s26 = smov 0   ;;  %s827_s27 = smov 0  }
   0x3 LB: > { %s842_s28 = sadd.s32 4294967295, %s777_s27   ;;  %s622_s29 = sadd.s32 4294967294, %s777_s27   ;;  %s777_s27 = sphi %s827_s27, %s999_s27   ;;  %s773_s26 = sphi %s825_s26, %s998_s26   ;;  %s769_s25 = sphi %s823_s25, %s997_s25   ;;  %s765_s24 = sphi %s821_s24, %s996_s24  }
   0x4   : > { %s846_s30 = sadd.s32 1, %s777_s27   ;;  %s179_s8 = sadd.s32 1, %s773_s26 }
   0x5   : > { %s176_s9 = ssub.s32 %s777_s27, %s846_s30  ;;  %p189_p0 = scmp.ne.s32.totalorder %s773_s26, %s769_s25 }
   0x6   : > { %p177_p1 = scmp.eq.s32.totalorder %s176_s9, 0  ;;  %p190_p2 = scmp.eq.s32.totalorder %s842_s28, 1 }
   0x7   : > { %p195_p3 = scmp.ne.s32.totalorder %s769_s25, %s765_s24  ;;  %p196_p4 = scmp.eq.s32.totalorder %s622_s29, 1 }
   0x8   : > { %s857_s10 = scalar_select %p177_p1, %s773_s26, %s179_s8  }
   0x9   : > { %p859_p5 = por %p190_p2, %p189_p0  ;;  %p863_p6 = por %p196_p4, %p195_p3 }
   0xa   : > { %p625_p7 = scmp.ge.s32.totalorder %s777_s27, 1  ;;  %p241_p8 = scmp.lt.s32.totalorder %s777_s27, 3 }
   0xc   : > { %p242_p9 = pnand %p625_p7, %p241_p8 }
   0xd   : > { %s627_s17 = sshll.u32 (!%p242_p9), %s842_s28, 3  ;;  %s270_s16 = sand.u32 (!%p242_p9), 1, %s769_s25  }
   0xe   : > { %245 = sbr.rel (%p242_p9) target bundleno = 487 (0x1e7), region = 48  ;;  %p274_p10 = scmp.lt.s32.totalorder (!%p242_p9), %s627_s17, 15 }
   0xf   : > { %s626_s19 = sshll.u32 (!%p242_p9), %s270_s16, 6  ;;  %s659_s21 = sshll.u32 (!%p242_p9), %s842_s28, 6 }
  0x10   : > { %s556_s29 = scalar_lea.hbm (!%p242_p9), %s993_s7, %s659_s21  ;;  %s545_s13 = scalar_lea.sflag (!%p242_p9), [#allocation3], %s270_s16 }
  0x11   : > { %s559_s9 = sshll.u32 (!%p242_p9), %s556_s29, 4  ;;  %s735_s18 = scalar_lea.hbm (!%p242_p9), %s993_s7, 128  ;;  %s560_s9 = int_to_ptr.hbm [resolvable:$true] %s559_s9 }
  0x12   : > { %s729_s14 = sshra.s32 (!%p242_p9), %s560_s9, 4  ;;  %s730_s14 = int_to_ptr.hbm [resolvable:$true] %s729_s14 }
  0x13   : > { %v290_v0 = vld [vmem:[%s987_s1 + $0x10] sm:$0x3]  ;;  %vm320_vm0 = vcmask 1041408   ;;  %v289_v1 = vld [vmem:[%s987_s1 + $0x8] sm:$0xff]  ;;  %v288_v2 = vld [vmem:[%s987_s1] sm:$0xff]  ;;  %s1001_s17 = smov (!%p274_p10, %s627_s17), 15  ;;  %p736_p0 = scmp.lt.s32.totalorder %s730_s14, %s993_s7 }
  0x14   : > { %629 = vmatpush.msk.msra.mxu0 %vm320_vm0, %v290_v0  ;;  %660 = vmatpush.msk.msra.mxu3 %vm320_vm0, %v290_v0  ;;  %s628_s20 = sshll.u32 %s1001_s17, 3  ;;  %vm295_vm1 = vcmask 146432   ;;  %v376_v7 = vld [vmem:[%s989_s3 + $0x18] sm:$0xff]  ;;  %v375_v12 = vld [vmem:[%s989_s3 + $0x10] sm:$0xff]  ;;  %v374_v13 = vld [vmem:[%s989_s3 + $0x8] sm:$0xff]  ;;  %vm381_vm2 = vcmask 261120  }
  0x15   : > { %s277_s23 = scalar_lea.vmem %s986_s0, %s628_s20  ;;  %418 = vmatpush.msra.mxu1 %v376_v7  ;;  %v373_v14 = vld [vmem:[%s989_s3] sm:$0xff]  ;;  %v458_v28 = vld [vmem:[%s991_s5 + $0x18] sm:$0xff]  ;;  %v457_v41 = vld [vmem:[%s991_s5 + $0x10] sm:$0xff]  ;;  %s942_s20 = scalar_lea.vmem [#allocation2], %s626_s19 }
  0x16   : > { %338 = vmatpush.msra.mxu0 %v289_v1  ;;  %661 = vmatpush.msra.mxu3 %v289_v1  ;;  %v280_v3 = vld [vmem:[%s277_s23] sm:$0xff]  ;;  %v281_v4 = vld [vmem:[%s277_s23 + $0x8] sm:$0xff]  ;;  %v282_v5 = vld [vmem:[%s277_s23 + $0x10] sm:$0xff]  ;;  %s557_s8 = sshll.u32 %s942_s20, 4  ;;  %s731_s28 = scalar_lea.hbm %s730_s14, 64  ;;  %s558_s8 = int_to_ptr.vmem [resolvable:$true] %s557_s8 }
  0x17   : > { %v287_v6 = vld [vmem:[%s277_s23 + $0x38] sm:$0xff]  ;;  %v284_v9 = vld [vmem:[%s277_s23 + $0x20] sm:$0xff]  ;;  %v285_v10 = vld [vmem:[%s277_s23 + $0x28] sm:$0xff]  ;;  %419 = vmatpush.msra.mxu1 %v375_v12  ;;  %499 = vmatpush.msra.mxu2 %v458_v28  ;;  %p732_p11 = scmp.ne.s32.totalorder %s730_s14, %s731_s28  ;;  %p737_p1 = scmp.lt.s32.totalorder %s735_s18, %s731_s28 }
  0x18   : > { %339 = vmatpush.msra.mxu0 %v288_v2  ;;  %662 = vmatpush.msra.mxu3 %v288_v2  ;;  %v283_v8 = vld [vmem:[%s277_s23 + $0x18] sm:$0xff]  ;;  %v286_v11 = vld [vmem:[%s277_s23 + $0x30] sm:$0xff]  ;;  %v712_v15 = vld [vmem:[%s988_s2] ss:$0 sm:$0xff] }
  0x19   : > { %630 = vmatmul.msk.f32.vlgmr.msra.gmra.mxu0 %vm295_vm1, %v280_v3  ;;  %637 = vmatmul.msk.f32.vlgmr.msra.gmra.mxu3 %vm295_vm1, %v287_v6  ;;  %v456_v42 = vld [vmem:[%s991_s5 + $0x8] sm:$0xff]  ;;  %v455_v43 = vld [vmem:[%s991_s5] sm:$0xff]  ;;  %p733_p12 = pnand %p732_p11, %p859_p5  ;;  %p738_p2 = por %p737_p1, %p736_p0 }
  0x1a   : > { %663 = vmatpush.msrb.mxu3 %v376_v7  ;;  %420 = vmatpush.msra.mxu1 %v374_v13  ;;  %v713_v44 = vld [vmem:[%s990_s4] ss:$0 sm:$0xff] }
  0x1b   : > { %500 = vmatpush.msra.mxu2 %v457_v41  ;;  %p734_p13 = pneg %p733_p12 }
  0x1c   : > { %664 = vmatpush.msrb.mxu3 %v375_v12  ;;  %421 = vmatpush.msra.mxu1 %v373_v14 }
  0x1d   : > { %501 = vmatpush.msra.mxu2 %v456_v42  ;;  %p739_p3 = pnand %p738_p2, %p734_p13 }
  0x1e   : > { %665 = vmatpush.msrb.mxu3 %v374_v13 }
  0x1f   : > { %502 = vmatpush.msra.mxu2 %v455_v43 }
  0x20   : > { %666 = vmatpush.msrb.mxu3 %v373_v14 }
  0x21   : > { %631 = vmatmul.msk.f32.gmra.mxu0 %vm295_vm1, %v281_v4 }
  0x22   : > { %667 = vmatpush.msra.mxu3 %v458_v28 }
  0x24   : > { %668 = vmatpush.msra.mxu3 %v457_v41 }
  0x26   : > { %669 = vmatpush.msra.mxu3 %v456_v42 }
  0x28   : > { %670 = vmatpush.msra.mxu3 %v455_v43 }
  0x29   : > { %632 = vmatmul.msk.f32.gmra.mxu0 %vm295_vm1, %v282_v5  ;;  %v714_v5 = vld [vmem:[%s992_s6] ss:$0 sm:$0xff] }
  0x31   : > { %633 = vmatmul.msk.f32.gmra.mxu0 %vm295_vm1, %v283_v8 }
  0x39   : > { %634 = vmatmul.msk.f32.gmra.mxu0 %vm295_vm1, %v284_v9 }
  0x41   : > { %635 = vmatmul.msk.f32.gmra.mxu0 %vm295_vm1, %v285_v10 }
  0x49   : > { %636 = vmatmul.msk.f32.gmra.mxu0 %vm295_vm1, %v286_v11 }
  0x96   : > { %v341_v16 = vpop.f32.mrf.mxu0 }
  0x97   : > { %v342_v17 = vadd.f32 %v712_v15, %v341_v16 }
  0x99   : > { %v365_v18 = vmax.f32 %v342_v17, 0.0 }
  0x9b   : > { %638 = vmatmul.msk.f32.vlgmr.msra.gmra.mxu1 %vm381_vm2, %v365_v18 }
  0x9c   : > { %v362_v37 = vpop.f32.mrf.mxu3 }
  0x9d   : > { %v363_v39 = vadd.f32 %v712_v15, %v362_v37 }
  0x9e   : > { %v344_v19 = vpop.f32.mrf.mxu0 }
  0x9f   : > { %v345_v20 = vadd.f32 %v712_v15, %v344_v19  ;;  %v372_v40 = vmax.f32 %v363_v39, 0.0 }
  0xa1   : > { %v366_v21 = vmax.f32 %v345_v20, 0.0 }
  0xa3   : > { %639 = vmatmul.msk.f32.gmra.mxu1 %vm381_vm2, %v366_v21 }
  0xa6   : > { %v347_v22 = vpop.f32.mrf.mxu0 }
  0xa7   : > { %v348_v23 = vadd.f32 %v712_v15, %v347_v22 }
  0xa9   : > { %v367_v24 = vmax.f32 %v348_v23, 0.0 }
  0xab   : > { %640 = vmatmul.msk.f32.gmra.mxu1 %vm381_vm2, %v367_v24 }
  0xae   : > { %v350_v25 = vpop.f32.mrf.mxu0 }
  0xaf   : > { %v351_v26 = vadd.f32 %v712_v15, %v350_v25 }
  0xb1   : > { %v368_v27 = vmax.f32 %v351_v26, 0.0 }
  0xb3   : > { %641 = vmatmul.msk.f32.gmra.mxu1 %vm381_vm2, %v368_v27 }
  0xb6   : > { %v353_v29 = vpop.f32.mrf.mxu0 }
  0xb7   : > { %v354_v30 = vadd.f32 %v712_v15, %v353_v29 }
  0xb9   : > { %v369_v31 = vmax.f32 %v354_v30, 0.0 }
  0xbb   : > { %642 = vmatmul.msk.f32.gmra.mxu1 %vm381_vm2, %v369_v31 }
  0xbe   : > { %v356_v32 = vpop.f32.mrf.mxu0 }
  0xbf   : > { %v357_v33 = vadd.f32 %v712_v15, %v356_v32 }
  0xc1   : > { %v370_v34 = vmax.f32 %v357_v33, 0.0 }
  0xc3   : > { %643 = vmatmul.msk.f32.gmra.mxu1 %vm381_vm2, %v370_v34 }
  0xc6   : > { %v359_v35 = vpop.f32.mrf.mxu0 }
  0xc7   : > { %v360_v36 = vadd.f32 %v712_v15, %v359_v35 }
  0xc9   : > { %v371_v38 = vmax.f32 %v360_v36, 0.0 }
  0xcb   : > { %644 = vmatmul.msk.f32.vlgmr.msrb.gmra.mxu3 %vm381_vm2, %v371_v38 }
  0xd3   : > { %645 = vmatmul.msk.f32.gmra.mxu3 %vm381_vm2, %v372_v40 }
 0x118   : > { %v423_v45 = vpop.f32.mrf.mxu1 }
 0x119   : > { %v424_v46 = vadd.f32 %v713_v44, %v423_v45 }
 0x11b   : > { %v447_v47 = vmax.f32 %v424_v46, 0.0 }
 0x11d   : > { %646 = vmatmul.msk.f32.vlgmr.msra.gmra.mxu2 %vm381_vm2, %v447_v47 }
 0x120   : > { %v426_v48 = vpop.f32.mrf.mxu1 }
 0x121   : > { %v427_v49 = vadd.f32 %v713_v44, %v426_v48 }
 0x123   : > { %v448_v50 = vmax.f32 %v427_v49, 0.0 }
 0x125   : > { %647 = vmatmul.msk.f32.gmra.mxu2 %vm381_vm2, %v448_v50 }
 0x128   : > { %v429_v51 = vpop.f32.mrf.mxu1 }
 0x129   : > { %v430_v52 = vadd.f32 %v713_v44, %v429_v51 }
 0x12b   : > { %v449_v53 = vmax.f32 %v430_v52, 0.0 }
 0x12d   : > { %648 = vmatmul.msk.f32.gmra.mxu2 %vm381_vm2, %v449_v53 }
 0x130   : > { %v432_v54 = vpop.f32.mrf.mxu1 }
 0x131   : > { %v433_v55 = vadd.f32 %v713_v44, %v432_v54 }
 0x133   : > { %v450_v56 = vmax.f32 %v433_v55, 0.0 }
 0x135   : > { %649 = vmatmul.msk.f32.gmra.mxu2 %vm381_vm2, %v450_v56 }
 0x138   : > { %v435_v57 = vpop.f32.mrf.mxu1 }
 0x139   : > { %v436_v58 = vadd.f32 %v713_v44, %v435_v57 }
 0x13b   : > { %v451_v59 = vmax.f32 %v436_v58, 0.0 }
 0x13d   : > { %650 = vmatmul.msk.f32.gmra.mxu2 %vm381_vm2, %v451_v59 }
 0x140   : > { %v438_v60 = vpop.f32.mrf.mxu1 }
 0x141   : > { %v439_v61 = vadd.f32 %v713_v44, %v438_v60 }
 0x143   : > { %v452_v62 = vmax.f32 %v439_v61, 0.0 }
 0x145   : > { %651 = vmatmul.msk.f32.gmra.mxu2 %vm381_vm2, %v452_v62 }
 0x14e   : > { %v441_v63 = vpop.f32.mrf.mxu3 }
 0x14f   : > { %v442_v0 = vadd.f32 %v713_v44, %v441_v63 }
 0x151   : > { %v453_v1 = vmax.f32 %v442_v0, 0.0 }
 0x153   : > { %652 = vmatmul.msk.f32.vlgmr.msra.gmra.mxu3 %vm381_vm2, %v453_v1 }
 0x156   : > { %v444_v2 = vpop.f32.mrf.mxu3 }
 0x157   : > { %v445_v3 = vadd.f32 %v713_v44, %v444_v2 }
 0x159   : > { %v454_v4 = vmax.f32 %v445_v3, 0.0 }
 0x15b   : > { %653 = vmatmul.msk.f32.gmra.mxu3 %vm381_vm2, %v454_v4 }
 0x1a0   : > { %v504_v6 = vpop.f32.mrf.mxu2 }
 0x1a1   : > { %v505_v7 = vadd.f32 %v714_v5, %v504_v6 }
 0x1a3   : > { %v528_v8 = vmax.f32 %v505_v7, 0.0 }
 0x1a5   : > { %536 = vst [vmem:[%s942_s20] sm:$0xff] %v528_v8 }
 0x1a8   : > { %v507_v9 = vpop.f32.mrf.mxu2 }
 0x1a9   : > { %v508_v10 = vadd.f32 %v714_v5, %v507_v9 }
 0x1ab   : > { %v529_v11 = vmax.f32 %v508_v10, 0.0 }
 0x1ad   : > { %537 = vst [vmem:[%s942_s20 + $0x8] sm:$0xff] %v529_v11 }
 0x1b0   : > { %v510_v12 = vpop.f32.mrf.mxu2 }
 0x1b1   : > { %v511_v13 = vadd.f32 %v714_v5, %v510_v12 }
 0x1b3   : > { %v530_v14 = vmax.f32 %v511_v13, 0.0 }
 0x1b5   : > { %538 = vst [vmem:[%s942_s20 + $0x10] sm:$0xff] %v530_v14 }
 0x1b8   : > { %v513_v15 = vpop.f32.mrf.mxu2 }
 0x1b9   : > { %v514_v16 = vadd.f32 %v714_v5, %v513_v15 }
 0x1bb   : > { %v531_v17 = vmax.f32 %v514_v16, 0.0 }
 0x1bd   : > { %539 = vst [vmem:[%s942_s20 + $0x18] sm:$0xff] %v531_v17 }
 0x1c0   : > { %v516_v18 = vpop.f32.mrf.mxu2 }
 0x1c1   : > { %v517_v19 = vadd.f32 %v714_v5, %v516_v18 }
 0x1c3   : > { %v532_v20 = vmax.f32 %v517_v19, 0.0 }
 0x1c5   : > { %540 = vst [vmem:[%s942_s20 + $0x20] sm:$0xff] %v532_v20 }
 0x1c8   : > { %v519_v21 = vpop.f32.mrf.mxu2 }
 0x1c9   : > { %v520_v22 = vadd.f32 %v714_v5, %v519_v21 }
 0x1cb   : > { %v533_v23 = vmax.f32 %v520_v22, 0.0 }
 0x1cd   : > { %541 = vst [vmem:[%s942_s20 + $0x28] sm:$0xff] %v533_v23 }
 0x1d6   : > { %v522_v24 = vpop.f32.mrf.mxu3 }
 0x1d7   : > { %v523_v25 = vadd.f32 %v714_v5, %v522_v24 }
 0x1d9   : > { %v534_v26 = vmax.f32 %v523_v25, 0.0 }
 0x1db   : > { %542 = vst [vmem:[%s942_s20 + $0x30] sm:$0xff] %v534_v26 }
 0x1de   : > { %v525_v27 = vpop.f32.mrf.mxu3 }
 0x1df   : > { %v526_v28 = vadd.f32 %v714_v5, %v525_v27 }
 0x1e1   : > { %v535_v29 = vmax.f32 %v526_v28, 0.0 }
 0x1e3   : > { %543 = vst [vmem:[%s942_s20 + $0x38] sm:$0xff] %v535_v29 }
 0x1e4   : > { %742 = shalt.err (!%p739_p3)
}
 0x1e5   : > { %s779_s16 = smov 128   ;;  %s780_s20 = smov 8  }
 0x1e6   : > { %671 = dma.vmem_to_hbm [thread:$0]  (%p859_p5), %s558_s8, 1024, %s560_s9, %s545_s13, %s779_s16, %s779_s16, %s780_s20  }
 0x1e7 PF: > { %p677_p4 = scmp.ge.s32.totalorder %s777_s27, 2  ;;  %s574_s22 = sand.u32 1, %s765_s24  }
 0x1e8   : > { %s575_s23 = scalar_lea.sflag [#allocation3], %s574_s22 }
 0x1e9   : > { %p674_p7 = pnand %p677_p4, %p863_p6 }
 0x1eb   : > { %p675_p8 = pneg %p674_p7 }
 0x1ed   : > { %760 = dma.done.wait (%p675_p8), %s575_s23, 1024  }
 0x1ee   : > { %762 = vsyncadd (%p675_p8), %s575_s23, 4294966272  ;;  %p17_p9 = scmp.ge.s32.totalorder %s846_s30, 4   ;;  %s996_s24 = smov %s769_s25 }
 0x1ef   : > { %s997_s25 = smov %s773_s26  ;;  %s998_s26 = smov %s857_s10 }
 0x1f0   : > { %s999_s27 = smov %s846_s30  ;;  %19 = sbr.rel (!%p17_p9) target bundleno = 3 (0x3), region = 83 }
 0x1f5   :  { %581 = vsyncpa [#allocation3], 1 }
 0x1f6   :  { %583 = vsyncpa [#allocation3 + $0x1], 1 }

</bundles_post_ra>
